<compile_context>
chip_gen: v7x
topology: tpu7x:2x2x1
jax: 0.10.0
libtpu: 0.0.40
codegen_flags: <defaults>
</compile_context>

<pallas_src>
import jax
import jax.numpy as jnp
from jax.experimental import pallas as pl
from jax.experimental.pallas import tpu as pltpu

LANE = 128                      # TPU lane width
_IN, _H1, _H2, _OUT = 2, 100, 64, 4
_MAX_TB = 2048                  # max batch rows per grid step


def _round_up(n, m):
    return ((n + m - 1) // m) * m


def _mlp_kernel(x_ref, w1_ref, b1_ref, w2_ref, b2_ref, w3_ref, b3_ref, o_ref):
    # x: (TB, 2)   w1: (8, 128) (rows 0/1 live)   w2, w3: (128, 128)
    # b1, b2, b3: (1, 128)   out: (TB, 128)
    x = x_ref[...]
    w1 = w1_ref[...]
    b1 = b1_ref[...]

    # Layer 1: K=2 contraction on the VPU (broadcast-FMA), skipping the MXU.
    h1 = x[:, 0:1] * w1[0:1, :] + x[:, 1:2] * w1[1:2, :] + b1
    h1 = jnp.maximum(h1, 0.0)                                   # ReLU

    # Layer 2: (TB,128) @ (128,128) on the MXU, f32 accumulation.
    h2 = jnp.dot(h1, w2_ref[...], preferred_element_type=jnp.float32) + b2_ref[...]
    h2 = jnp.maximum(h2, 0.0)                                   # ReLU

    # Layer 3: (TB,128) @ (128,128); padded output columns stay exactly 0.
    out = jnp.dot(h2, w3_ref[...], preferred_element_type=jnp.float32) + b3_ref[...]
    o_ref[...] = out.astype(o_ref.dtype)


def _pad_params(params):
    """Zero-pad weights/biases once to lane/sublane-friendly shapes."""
    w1, b1, w2, b2, w3, b3 = params
    f32 = jnp.float32
    w1p = jnp.zeros((8, LANE), f32).at[:_IN, :_H1].set(w1.astype(f32))
    b1p = jnp.zeros((1, LANE), f32).at[:, :_H1].set(b1.reshape(1, -1).astype(f32))
    w2p = jnp.zeros((LANE, LANE), f32).at[:_H1, :_H2].set(w2.astype(f32))
    b2p = jnp.zeros((1, LANE), f32).at[:, :_H2].set(b2.reshape(1, -1).astype(f32))
    w3p = jnp.zeros((LANE, LANE), f32).at[:_H2, :_OUT].set(w3.astype(f32))
    b3p = jnp.zeros((1, LANE), f32).at[:, :_OUT].set(b3.reshape(1, -1).astype(f32))
    return w1p, b1p, w2p, b2p, w3p, b3p


@jax.jit
def network_forward(x, params):
    """Forward pass of `network`. x: (B, 2) float32 -> (B, 4) float32."""
    B = x.shape[0]
    x = x.reshape(B, -1).astype(jnp.float32)        # mirrors x.view(B, -1)
    w1p, b1p, w2p, b2p, w3p, b3p = _pad_params(params)

    # Batch tile: multiple of 8 (sublane), capped at _MAX_TB.  Double-buffered
    # x/out tiles + resident weights stay well under the scoped-VMEM limit
    # (~2.2 MiB at TB=2048), while big tiles amortize per-step overhead.
    TB = min(_MAX_TB, _round_up(B, 8))
    B_pad = _round_up(B, TB)
    if B_pad != B:
        x = jnp.pad(x, ((0, B_pad - B), (0, 0)))

    const = lambda i: (0, 0)
    out = pl.pallas_call(
        _mlp_kernel,
        out_shape=jax.ShapeDtypeStruct((B_pad, LANE), jnp.float32),
        grid=(B_pad // TB,),
        in_specs=[
            pl.BlockSpec((TB, _IN), lambda i: (i, 0)),      # x (batch-tiled)
            pl.BlockSpec((8, LANE), const),                 # w1 (resident)
            pl.BlockSpec((1, LANE), const),                 # b1
            pl.BlockSpec((LANE, LANE), const),              # w2
            pl.BlockSpec((1, LANE), const),                 # b2
            pl.BlockSpec((LANE, LANE), const),              # w3
            pl.BlockSpec((1, LANE), const),                 # b3
        ],
        out_specs=pl.BlockSpec((TB, LANE), lambda i: (i, 0)),
        compiler_params=pltpu.CompilerParams(
            dimension_semantics=("parallel",)),
    )(x, w1p, b1p, w2p, b2p, w3p, b3p)

    return out[:B, :_OUT]


def init_params(key):
    """Deterministic init matching nn.Linear shapes (weights stored (in, out)).

    Mimics PyTorch's default U(-1/sqrt(fan_in), 1/sqrt(fan_in)) init.
    """
    dims = [(_IN, _H1), (_H1, _H2), (_H2, _OUT)]
    params = []
    for fan_in, fan_out in dims:
        key, kw, kb = jax.random.split(key, 3)
        bound = 1.0 / jnp.sqrt(jnp.float32(fan_in))
        w = jax.random.uniform(kw, (fan_in, fan_out), jnp.float32, -bound, bound)
        b = jax.random.uniform(kb, (fan_out,), jnp.float32, -bound, bound)
        params.extend([w, b])
    return tuple(params)


def reference_forward(x, params):
    """Plain-JAX reference for correctness checking."""
    w1, b1, w2, b2, w3, b3 = params
    x = x.reshape(x.shape[0], -1)
    h1 = jnp.maximum(x @ w1 + b1, 0.0)
    h2 = jnp.maximum(h1 @ w2 + b2, 0.0)
    return h2 @ w3 + b3


if __name__ == "__main__":
    key = jax.random.PRNGKey(0)
    k_params, k_x1, k_x2, k_x3 = jax.random.split(key, 4)

    params = init_params(k_params)

    # Tiny batch (matches Linear(2, ...) after x.view(B, -1)): single tile,
    # batch not a multiple of 8 -> exercises row-padding path.
    x_small = jax.random.normal(k_x1, (5, _IN), jnp.float32)
    y_small = jax.block_until_ready(network_forward(x_small, params))
    assert y_small.shape == (5, _OUT)
    assert jnp.allclose(y_small, reference_forward(x_small, params),
                        atol=1e-5, rtol=1e-5)

    # Medium batch: single grid step, TB == round_up(B, 8).
    x_mid = jax.random.normal(k_x2, (520, _IN), jnp.float32)
    y_mid = jax.block_until_ready(network_forward(x_mid, params))
    assert y_mid.shape == (520, _OUT)
    assert jnp.allclose(y_mid, reference_forward(x_mid, params),
                        atol=1e-5, rtol=1e-5)

    # Larger, non-aligned batch: exercises multi-step batch grid + padding.
    x_big = jax.random.normal(k_x3, (4100, _IN), jnp.float32)
    y_big = jax.block_until_ready(network_forward(x_big, params))
    assert y_big.shape == (4100, _OUT)
    assert jnp.allclose(y_big, reference_forward(x_big, params),
                        atol=1e-5, rtol=1e-5)

    print("KERNEL_OK")
</pallas_src>

<mosaic_0001>
module attributes {stable_mosaic.version = 11 : i64} {
  func.func @_mlp_kernel(%arg0: i32, %arg1: memref<8x2xf32, #tpu.memory_space<vmem>>, %arg2: memref<8x128xf32, #tpu.memory_space<vmem>>, %arg3: memref<1x128xf32, #tpu.memory_space<vmem>>, %arg4: memref<128x128xf32, #tpu.memory_space<vmem>>, %arg5: memref<1x128xf32, #tpu.memory_space<vmem>>, %arg6: memref<128x128xf32, #tpu.memory_space<vmem>>, %arg7: memref<1x128xf32, #tpu.memory_space<vmem>>, %arg8: memref<8x128xf32, #tpu.memory_space<vmem>>) attributes {dimension_semantics = [#tpu.dimension_semantics<parallel>], iteration_bounds = array<i64: 1>, scalar_prefetch = 0 : i64, scratch_operands = 0 : i64, tpu.core_type = #tpu.core_type<tc>, window_params = [{transform_indices = @transform_0, window_bounds = array<i64: 8, 2>}, {pipeline_mode = #tpu.pipeline_mode<synchronous>, transform_indices = @transform_1, window_bounds = array<i64: 8, 128>}, {pipeline_mode = #tpu.pipeline_mode<synchronous>, transform_indices = @transform_2, window_bounds = array<i64: 1, 128>}, {pipeline_mode = #tpu.pipeline_mode<synchronous>, transform_indices = @transform_3, window_bounds = array<i64: 128, 128>}, {pipeline_mode = #tpu.pipeline_mode<synchronous>, transform_indices = @transform_4, window_bounds = array<i64: 1, 128>}, {pipeline_mode = #tpu.pipeline_mode<synchronous>, transform_indices = @transform_5, window_bounds = array<i64: 128, 128>}, {pipeline_mode = #tpu.pipeline_mode<synchronous>, transform_indices = @transform_6, window_bounds = array<i64: 1, 128>}, {transform_indices = @transform_7, window_bounds = array<i64: 8, 128>}]} {
    %c0 = arith.constant 0 : index
    %c0_0 = arith.constant 0 : index
    %0 = vector.load %arg1[%c0, %c0_0] : memref<8x2xf32, #tpu.memory_space<vmem>>, vector<8x2xf32>
    %c0_1 = arith.constant 0 : index
    %c0_2 = arith.constant 0 : index
    %1 = vector.load %arg2[%c0_1, %c0_2] : memref<8x128xf32, #tpu.memory_space<vmem>>, vector<8x128xf32>
    %c0_3 = arith.constant 0 : index
    %c0_4 = arith.constant 0 : index
    %2 = vector.load %arg3[%c0_3, %c0_4] : memref<1x128xf32, #tpu.memory_space<vmem>>, vector<1x128xf32>
    %3 = vector.extract_strided_slice %0 {offsets = [0, 0], sizes = [8, 1], strides = [1, 1]} : vector<8x2xf32> to vector<8x1xf32>
    %4 = vector.extract_strided_slice %1 {offsets = [0, 0], sizes = [1, 128], strides = [1, 1]} : vector<8x128xf32> to vector<1x128xf32>
    %5 = vector.broadcast %3 : vector<8x1xf32> to vector<8x128xf32>
    %6 = vector.broadcast %4 : vector<1x128xf32> to vector<8x128xf32>
    %7 = arith.mulf %5, %6 : vector<8x128xf32>
    %8 = vector.extract_strided_slice %0 {offsets = [0, 1], sizes = [8, 1], strides = [1, 1]} : vector<8x2xf32> to vector<8x1xf32>
    %9 = vector.extract_strided_slice %1 {offsets = [1, 0], sizes = [1, 128], strides = [1, 1]} : vector<8x128xf32> to vector<1x128xf32>
    %10 = vector.broadcast %8 : vector<8x1xf32> to vector<8x128xf32>
    %11 = vector.broadcast %9 : vector<1x128xf32> to vector<8x128xf32>
    %12 = arith.mulf %10, %11 : vector<8x128xf32>
    %13 = arith.addf %7, %12 : vector<8x128xf32>
    %14 = vector.broadcast %2 : vector<1x128xf32> to vector<8x128xf32>
    %15 = arith.addf %13, %14 : vector<8x128xf32>
    %cst = arith.constant 0.000000e+00 : f32
    %16 = vector.broadcast %cst : f32 to vector<8x128xf32>
    %17 = arith.maximumf %15, %16 : vector<8x128xf32>
    %c0_5 = arith.constant 0 : index
    %c0_6 = arith.constant 0 : index
    %18 = vector.load %arg4[%c0_5, %c0_6] : memref<128x128xf32, #tpu.memory_space<vmem>>, vector<128x128xf32>
    %cst_7 = arith.constant dense<0.000000e+00> : vector<8x128xf32>
    %19 = tpu.matmul %17, %18, %cst_7 {dimension_numbers = #tpu.dot_dimension_numbers<[1], [0], [0], [1], [0, 0, 1, 1], [], []>} : vector<8x128xf32>, vector<128x128xf32>, vector<8x128xf32> -> vector<8x128xf32>
    %c0_8 = arith.constant 0 : index
    %c0_9 = arith.constant 0 : index
    %20 = vector.load %arg5[%c0_8, %c0_9] : memref<1x128xf32, #tpu.memory_space<vmem>>, vector<1x128xf32>
    %21 = vector.broadcast %20 : vector<1x128xf32> to vector<8x128xf32>
    %22 = arith.addf %19, %21 : vector<8x128xf32>
    %cst_10 = arith.constant 0.000000e+00 : f32
    %23 = vector.broadcast %cst_10 : f32 to vector<8x128xf32>
    %24 = arith.maximumf %22, %23 : vector<8x128xf32>
    %c0_11 = arith.constant 0 : index
    %c0_12 = arith.constant 0 : index
    %25 = vector.load %arg6[%c0_11, %c0_12] : memref<128x128xf32, #tpu.memory_space<vmem>>, vector<128x128xf32>
    %cst_13 = arith.constant dense<0.000000e+00> : vector<8x128xf32>
    %26 = tpu.matmul %24, %25, %cst_13 {dimension_numbers = #tpu.dot_dimension_numbers<[1], [0], [0], [1], [0, 0, 1, 1], [], []>} : vector<8x128xf32>, vector<128x128xf32>, vector<8x128xf32> -> vector<8x128xf32>
    %c0_14 = arith.constant 0 : index
    %c0_15 = arith.constant 0 : index
    %27 = vector.load %arg7[%c0_14, %c0_15] : memref<1x128xf32, #tpu.memory_space<vmem>>, vector<1x128xf32>
    %28 = vector.broadcast %27 : vector<1x128xf32> to vector<8x128xf32>
    %29 = arith.addf %26, %28 : vector<8x128xf32>
    %c0_16 = arith.constant 0 : index
    %c0_17 = arith.constant 0 : index
    %30 = vector.load %arg8[%c0_16, %c0_17] : memref<8x128xf32, #tpu.memory_space<vmem>>, vector<8x128xf32>
    tpu.vector_store %arg8[%c0_16, %c0_17], %29 {strides = array<i32>} : memref<8x128xf32, #tpu.memory_space<vmem>>, vector<8x128xf32>,
    return
  }
  func.func @transform_0(%arg0: i32) -> (i32, i32) {
    %c0_i32 = arith.constant 0 : i32
    %c0_i32_0 = arith.constant 0 : i32
    return %arg0, %c0_i32 : i32, i32
  }
  func.func @transform_1(%arg0: i32) -> (i32, i32) {
    %c0_i32 = arith.constant 0 : i32
    %c0_i32_0 = arith.constant 0 : i32
    %c0_i32_1 = arith.constant 0 : i32
    return %c0_i32, %c0_i32_0 : i32, i32
  }
  func.func @transform_2(%arg0: i32) -> (i32, i32) {
    %c0_i32 = arith.constant 0 : i32
    %c0_i32_0 = arith.constant 0 : i32
    %c0_i32_1 = arith.constant 0 : i32
    return %c0_i32, %c0_i32_0 : i32, i32
  }
  func.func @transform_3(%arg0: i32) -> (i32, i32) {
    %c0_i32 = arith.constant 0 : i32
    %c0_i32_0 = arith.constant 0 : i32
    %c0_i32_1 = arith.constant 0 : i32
    return %c0_i32, %c0_i32_0 : i32, i32
  }
  func.func @transform_4(%arg0: i32) -> (i32, i32) {
    %c0_i32 = arith.constant 0 : i32
    %c0_i32_0 = arith.constant 0 : i32
    %c0_i32_1 = arith.constant 0 : i32
    return %c0_i32, %c0_i32_0 : i32, i32
  }
  func.func @transform_5(%arg0: i32) -> (i32, i32) {
    %c0_i32 = arith.constant 0 : i32
    %c0_i32_0 = arith.constant 0 : i32
    %c0_i32_1 = arith.constant 0 : i32
    return %c0_i32, %c0_i32_0 : i32, i32
  }
  func.func @transform_6(%arg0: i32) -> (i32, i32) {
    %c0_i32 = arith.constant 0 : i32
    %c0_i32_0 = arith.constant 0 : i32
    %c0_i32_1 = arith.constant 0 : i32
    return %c0_i32, %c0_i32_0 : i32, i32
  }
  func.func @transform_7(%arg0: i32) -> (i32, i32) {
    %c0_i32 = arith.constant 0 : i32
    %c0_i32_0 = arith.constant 0 : i32
    return %arg0, %c0_i32 : i32, i32
  }
}

</mosaic_0001>

<bundles_post_ra>
// kernel: network_forward.1
= control target key start
LH: loop header
LB: loop body
LE: loop exit
PB: predicated region body
PF: predicated region fallthrough
CT: control target
= control target key end

     0   :  { %v411_v0 = vmov 0   ;;  %v412_v2 = vmov 0.0|0.0   ;;  %v413_v11 = vmov 1   ;;  %vm414_vm0 = vmmov 0   ;;  %s586_s0 = inlined_call_operand.vmem [shape: f32[8,2], index: 0, kind: input, shape index: {}]   ;;  %s587_s3 = inlined_call_operand.vmem [shape: f32[128,128], index: 3, kind: input, shape index: {}]   ;;  %s588_s5 = inlined_call_operand.vmem [shape: f32[128,128], index: 5, kind: input, shape index: {}]   ;;  %s589_s1 = inlined_call_operand.vmem [shape: f32[8,128], index: 1, kind: input, shape index: {}]   ;;  %s590_s2 = inlined_call_operand.vmem [shape: f32[1,128], index: 2, kind: input, shape index: {}]   ;;  %s591_s4 = inlined_call_operand.vmem [shape: f32[1,128], index: 4, kind: input, shape index: {}]   ;;  %s592_s6 = inlined_call_operand.vmem [shape: f32[1,128], index: 6, kind: input, shape index: {}]   ;;  %s593_s7 = inlined_call_operand.vmem [shape: f32[8,128], index: 7, kind: output, shape index: {}]  }
   0x1   :  { %409 = vset.pattern.permute.xlu0 %v411_v0  ;;  %v26_v1 = vld [vmem:[%s586_s0] sm:$0xff]  ;;  %356 = vmatprep.subr.bf16.mxu0 %v412_v2  ;;  %v58_v4 = vld [vmem:[%s587_s3 + $0x8] sm:$0xff]  ;;  %v59_v6 = vld [vmem:[%s587_s3 + $0x10] sm:$0xff]  ;;  %v415_v15 = vmov 0.0   ;;  %v34_v50 = vlaneseq }
   0x2   :  { %v57_v3 = vld [vmem:[%s587_s3] sm:$0xff]  ;;  %31 = vperm.xlu0 %409, %v26_v1   ;;  %v60_v7 = vld [vmem:[%s587_s3 + $0x18] sm:$0xff]  ;;  %380 = vmatprep.subr.bf16.mxu1 %v412_v2  ;;  %v62_v10 = vld [vmem:[%s587_s3 + $0x28] sm:$0xff] }
   0x3   :  { %v357_v5 = vpack.c.bf16 %v58_v4, %v57_v3  ;;  %v360_v8 = vpack.c.bf16 %v60_v7, %v59_v6  ;;  %v61_v9 = vld [vmem:[%s587_s3 + $0x20] sm:$0xff]  ;;  %v63_v13 = vld [vmem:[%s587_s3 + $0x30] sm:$0xff]  ;;  %v64_v14 = vld [vmem:[%s587_s3 + $0x38] sm:$0xff]  ;;  %318 = vmatprep.mubr.msk.f32.mxu0 %vm414_vm0, %v415_v15  ;;  %353 = vmatprep.mubr.msk.f32.mxu1 %vm414_vm0, %v415_v15  ;;  %v35_v51 = vshrl.u32 %v34_v50, 7 }
   0x4   :  { %v363_v12 = vpack.c.bf16 %v62_v10, %v61_v9  ;;  %v366_v16 = vpack.c.bf16 %v64_v14, %v63_v13  ;;  %v65_v17 = vld [vmem:[%s587_s3 + $0x40] sm:$0xff]  ;;  %v66_v18 = vld [vmem:[%s587_s3 + $0x48] sm:$0xff]  ;;  %v153_v22 = vld [vmem:[%s588_s5 + $0x10] sm:$0xff] }
   0x5   :  { %358 = vmatpush3.bf16.msra.mxu0 %v357_v5  ;;  %v369_v19 = vpack.c.bf16 %v66_v18, %v65_v17  ;;  %v151_v20 = vld [vmem:[%s588_s5] sm:$0xff]  ;;  %v152_v21 = vld [vmem:[%s588_s5 + $0x8] sm:$0xff]  ;;  %v67_v23 = vld [vmem:[%s587_s3 + $0x50] sm:$0xff]  ;;  %v36_v52 = vsub.s32 0, %v35_v51  ;;  %v45_v53 = vsub.s32 1, %v35_v51 }
   0x6   :  { %359 = vmatprep.subr.bf16.mxu0 %v412_v2  ;;  %410 = vset.pattern.permute.xlu0 %v413_v11  ;;  %v68_v24 = vld [vmem:[%s587_s3 + $0x58] sm:$0xff]  ;;  %v381_v25 = vpack.c.bf16 %v152_v21, %v151_v20  ;;  %v155_v29 = vld [vmem:[%s588_s5 + $0x20] sm:$0xff]  ;;  %v156_v30 = vld [vmem:[%s588_s5 + $0x28] sm:$0xff] }
   0x7   :  { %40 = vperm.xlu0 %410, %v26_v1   ;;  %v154_v26 = vld [vmem:[%s588_s5 + $0x18] sm:$0xff]  ;;  %v372_v28 = vpack.c.bf16 %v68_v24, %v67_v23  ;;  %v69_v31 = vld [vmem:[%s587_s3 + $0x60] sm:$0xff]  ;;  %v70_v32 = vld [vmem:[%s587_s3 + $0x68] sm:$0xff]  ;;  %v387_v33 = vpack.c.bf16 %v156_v30, %v155_v29 }
   0x8   :  { %382 = vmatpush3.bf16.msra.mxu1 %v381_v25  ;;  %v384_v27 = vpack.c.bf16 %v154_v26, %v153_v22  ;;  %v375_v34 = vpack.c.bf16 %v70_v32, %v69_v31  ;;  %v157_v35 = vld [vmem:[%s588_s5 + $0x30] sm:$0xff]  ;;  %v158_v36 = vld [vmem:[%s588_s5 + $0x38] sm:$0xff]  ;;  %v159_v41 = vld [vmem:[%s588_s5 + $0x40] sm:$0xff] }
   0x9   :  { %361 = vmatpush3.bf16.msra.mxu0 %v360_v8  ;;  %383 = vmatprep.subr.bf16.mxu1 %v412_v2  ;;  %v71_v37 = vld [vmem:[%s587_s3 + $0x70] sm:$0xff]  ;;  %v72_v38 = vld [vmem:[%s587_s3 + $0x78] sm:$0xff]  ;;  %v390_v39 = vpack.c.bf16 %v158_v36, %v157_v35  ;;  %v160_v42 = vld [vmem:[%s588_s5 + $0x48] sm:$0xff] }
   0xa   :  { %362 = vmatprep.subr.bf16.mxu0 %v412_v2  ;;  %v378_v40 = vpack.c.bf16 %v72_v38, %v71_v37  ;;  %v393_v43 = vpack.c.bf16 %v160_v42, %v159_v41  ;;  %v161_v44 = vld [vmem:[%s588_s5 + $0x50] sm:$0xff]  ;;  %v162_v45 = vld [vmem:[%s588_s5 + $0x58] sm:$0xff]  ;;  %v163_v47 = vld [vmem:[%s588_s5 + $0x60] sm:$0xff] }
   0xb   :  { %v396_v46 = vpack.c.bf16 %v162_v45, %v161_v44  ;;  %v164_v48 = vld [vmem:[%s588_s5 + $0x68] sm:$0xff]  ;;  %v27_v54 = vld [vmem:[%s589_s1] sm:$0xff]  ;;  %v165_v1 = vld [vmem:[%s588_s5 + $0x70] sm:$0xff] }
   0xc   :  { %385 = vmatpush3.bf16.msra.mxu1 %v384_v27  ;;  %v399_v49 = vpack.c.bf16 %v164_v48, %v163_v47  ;;  %v37_v56 = vrot.slane %v27_v54, %v36_v52  ;;  %v46_v57 = vrot.slane %v27_v54, %v45_v53  ;;  %v249_v61 = vld [vmem:[%s590_s2] ss:$0 sm:$0xff] }
   0xd   :  { %364 = vmatpush3.bf16.msra.mxu0 %v363_v12  ;;  %386 = vmatprep.subr.bf16.mxu1 %v412_v2  ;;  %v250_v4 = vld [vmem:[%s591_s4] ss:$0 sm:$0xff] }
   0xe   :  { %365 = vmatprep.subr.bf16.mxu0 %v412_v2  ;;  %v251_v9 = vld [vmem:[%s592_s6] ss:$0 sm:$0xff] }
  0x10   :  { %388 = vmatpush3.bf16.msra.mxu1 %v387_v33 }
  0x11   :  { %367 = vmatpush3.bf16.msra.mxu0 %v366_v16  ;;  %389 = vmatprep.subr.bf16.mxu1 %v412_v2 }
  0x12   :  { %368 = vmatprep.subr.bf16.mxu0 %v412_v2 }
  0x14   :  { %391 = vmatpush3.bf16.msra.mxu1 %v390_v39 }
  0x15   :  { %370 = vmatpush3.bf16.msra.mxu0 %v369_v19  ;;  %392 = vmatprep.subr.bf16.mxu1 %v412_v2 }
  0x16   :  { %371 = vmatprep.subr.bf16.mxu0 %v412_v2 }
  0x18   :  { %394 = vmatpush3.bf16.msra.mxu1 %v393_v43 }
  0x19   :  { %373 = vmatpush3.bf16.msra.mxu0 %v372_v28  ;;  %395 = vmatprep.subr.bf16.mxu1 %v412_v2 }
  0x1a   :  { %374 = vmatprep.subr.bf16.mxu0 %v412_v2 }
  0x1c   :  { %397 = vmatpush3.bf16.msra.mxu1 %v396_v46 }
  0x1d   :  { %376 = vmatpush3.bf16.msra.mxu0 %v375_v34  ;;  %398 = vmatprep.subr.bf16.mxu1 %v412_v2 }
  0x1e   :  { %377 = vmatprep.subr.bf16.mxu0 %v412_v2 }
  0x20   :  { %400 = vmatpush3.bf16.msra.mxu1 %v399_v49 }
  0x21   :  { %379 = vmatpush3.bf16.msra.mxu0 %v378_v40  ;;  %401 = vmatprep.subr.bf16.mxu1 %v412_v2  ;;  %v166_v2 = vld [vmem:[%s588_s5 + $0x78] sm:$0xff] }
  0x22   :  { %v402_v3 = vpack.c.bf16 %v166_v2, %v165_v1 }
  0x24   :  { %403 = vmatpush3.bf16.msra.mxu1 %v402_v3 }
  0x81   :  { %v32_v55 = vpop.permute.xlu0 %31 }
  0x82   :  { %v38_v59 = vmul.f32 %v37_v56, %v32_v55 }
  0x86   :  { %v41_v58 = vpop.permute.xlu0 %40 }
  0x87   :  { %v47_v60 = vmul.f32 %v46_v57, %v41_v58 }
  0x89   :  { %v48_v62 = vadd.f32 %v47_v60, %v38_v59 }
  0x8b   :  { %v55_v63 = vadd.f32 %v249_v61, %v48_v62 }
  0x8d   :  { %v56_v0 = vmax.f32 %v55_v63, 0.0 }
  0x8f   :  { %319 = vmatmul.mubr.f32.vlgmr.msra.gmra.mrb[0].mxu0 %v56_v0 }
 0x162   :  { %v146_v5 = vpop.f32.mrb[0].mxu0 }
 0x163   :  { %v147_v6 = vadd.f32 %v250_v4, %v146_v5  ;;  %v320_v7 = vpop.f32.mrb[1].mxu0 }
 0x165   :  { %v150_v8 = vmax.f32 %v147_v6, 0.0 }
 0x167   :  { %354 = vmatmul.mubr.f32.vlgmr.msra.gmra.mrb[0].mxu1 %v150_v8 }
 0x23a   :  { %v240_v10 = vpop.f32.mrb[0].mxu1 }
 0x23b   :  { %v241_v11 = vadd.f32 %v251_v9, %v240_v10  ;;  %v355_v12 = vpop.f32.mrb[1].mxu1 }
 0x23d   :  { %244 = vst [vmem:[%s593_s7] sm:$0xff] %v241_v11 }

</bundles_post_ra>
